<compile_context>
chip_gen: v7x
topology: tpu7x:2x2x1
jax: 0.10.0
libtpu: 0.0.40
codegen_flags: <defaults>
</compile_context>

<pallas_src>
import jax
import jax.numpy as jnp
from jax.experimental import pallas as pl
from jax.experimental.pallas import tpu as pltpu


# ------------------------------- kernel ----------------------------------- #

def _attention_kernel(g_ref, x_ref, wgT_ref, wxT_ref, bsum_ref, wpsiT_ref,
                      bpsi_ref, out_ref):
    """One (Nb, C, TP) block: Nb images x all channels x TP pixels (lanes)."""
    wgT = wgT_ref[...]          # (F_int, Fg)  streaming dtype
    wxT = wxT_ref[...]          # (F_int, Fl)  streaming dtype
    bsum = bsum_ref[...]        # (F_int, 1)   f32  (bg + bx folded)
    wpsiT = wpsiT_ref[...]      # (1, F_int)   f32  (kept f32: no wide casts)
    bpsi = bpsi_ref[...]        # (1, 1)       f32

    nb = g_ref.shape[0]         # static, small
    for n in range(nb):
        g = g_ref[n]            # (Fg, TP)
        x = x_ref[n]            # (Fl, TP)
        # 1x1 conv (+ folded BN) == channel matmul, f32 accumulation on MXU.
        g1 = jnp.dot(wgT, g, preferred_element_type=jnp.float32)
        x1 = jnp.dot(wxT, x, preferred_element_type=jnp.float32)
        a = jnp.maximum(g1 + x1 + bsum, 0.0)                  # (F_int, TP) f32
        # psi: 1x1 conv to a single channel (+ folded BN), then sigmoid.
        psi = jax.nn.sigmoid(
            jnp.dot(wpsiT, a, preferred_element_type=jnp.float32) + bpsi)
        # Gate the skip connection; psi broadcasts over the channel sublanes.
        out_ref[n] = (x.astype(jnp.float32) * psi).astype(out_ref.dtype)


# ------------------------------ helpers ------------------------------------ #

def _fold_bn(w, b, gamma, beta, mean, var, *, eps=1e-5):
    """Fold eval-mode BatchNorm into a 1x1 conv given as (Cin, Cout) weight."""
    scale = gamma / jnp.sqrt(var + eps)          # (Cout,)
    w_eff = w * scale[None, :]                   # (Cin, Cout)
    b_eff = (b - mean) * scale + beta            # (Cout,)
    return w_eff, b_eff


def _round_up(a, b):
    return (a + b - 1) // b * b


def _largest_divisor_leq(n, m):
    m = max(1, min(n, int(m)))
    while n % m:
        m -= 1
    return m


def _vmem_capacity_bytes():
    """Physical per-core VMEM; conservative 64 MiB (v7x) fallback."""
    try:
        return int(getattr(pltpu.get_tpu_info(), "vmem_capacity_bytes", 64 << 20))
    except Exception:
        return 64 << 20


# ------------------------------ wrapper ------------------------------------ #

def attention_block(g, x, params, *, tile_pixels=None, batch_block=None,
                    compute_dtype=None, out_dtype=None, eps=1e-5):
    """g, x: NCHW arrays.  Returns NCHW output = x * psi.

    tile_pixels:   optional override for the lane extent of each pixel tile
                   (rounded to 128); by default derived from the chip's VMEM.
    batch_block:   optional override for how many images share one block.
    compute_dtype: streaming dtype.  Defaults to x.dtype — pass bf16 INPUTS to
                   halve HBM traffic (a wrapper-side cast would cost an extra
                   HBM pass, so it is only done if you explicitly ask).
    out_dtype:     output dtype (defaults to x.dtype; bf16 cuts write traffic).
    eps:           BatchNorm eps used when folding running stats.
    """
    N, Fg, H, W = g.shape
    Nx, Fl, Hx, Wx = x.shape
    assert (N, H, W) == (Nx, Hx, Wx), "g and x must share batch/spatial dims"
    P = H * W

    compute_dtype = jnp.dtype(compute_dtype if compute_dtype is not None else x.dtype)
    out_dtype = jnp.dtype(out_dtype if out_dtype is not None else x.dtype)

    # Fold BN into the convs; pre-transpose weights to (Cout, Cin); fold the
    # two branch biases into one add.  These are tiny (done once, stays VMEM).
    wg_f, bg_f = _fold_bn(params["wg"], params["bg"], *params["bn_g"], eps=eps)
    wx_f, bx_f = _fold_bn(params["wx"], params["bx"], *params["bn_x"], eps=eps)
    wpsi_f, bpsi_f = _fold_bn(params["wpsi"], params["bpsi"], *params["bn_psi"],
                              eps=eps)
    F_int = wg_f.shape[1]

    wgT = wg_f.T.astype(compute_dtype)               # (F_int, Fg)
    wxT = wx_f.T.astype(compute_dtype)               # (F_int, Fl)
    wpsiT = wpsi_f.T.astype(jnp.float32)             # (1, F_int)  stays f32
    bsum = (bg_f + bx_f).astype(jnp.float32).reshape(F_int, 1)
    bpsi = bpsi_f.astype(jnp.float32).reshape(1, 1)

    # Free relayout NCHW -> (N, C, P): channels on sublanes, pixels on lanes.
    # No pad, no slice, no implicit cast (each would be a full extra HBM pass).
    g3 = g.reshape(N, Fg, P)
    x3 = x.reshape(N, Fl, P)
    if g3.dtype != compute_dtype:
        g3 = g3.astype(compute_dtype)
    if x3.dtype != compute_dtype:
        x3 = x3.astype(compute_dtype)

    # ---- generation-aware tile sizing (HBM-bound => biggest tile that fits).
    act_bytes = compute_dtype.itemsize
    out_bytes = out_dtype.itemsize
    P128 = _round_up(P, 128)
    stream_px = (Fg + Fl) * act_bytes + Fl * out_bytes           # HBM B / pixel
    vmem_px = 2 * stream_px + (3 * F_int + Fl + 2) * 4           # 2x bufs + f32 temps
    weight_bytes = 4 * (F_int * (Fg + Fl) + 2 * F_int + 2)
    margin = 2 << 20                                             # compiler scratch
    capacity = _vmem_capacity_bytes()
    budget = int(0.75 * capacity)          # ~48 MiB on v7x, ~96 MiB on v5e/v6e
    avail = max(budget - weight_bytes - margin, 128 * vmem_px)

    if tile_pixels is not None:
        tp = min(max(128, _round_up(int(tile_pixels), 128)), P128)
    else:
        tp = min(max(128, (avail // vmem_px) // 128 * 128), P128)
        # Prefer a tile that evenly divides the 128-padded pixel axis (no
        # ragged trailing tile) unless that would shrink the tile by > 2x.
        nblk = P128 // 128
        d = max(dd for dd in range(1, nblk + 1)
                if nblk % dd == 0 and dd * 128 <= tp)
        if 2 * d * 128 >= tp:
            tp = d * 128

    if batch_block is not None:
        Nb = _largest_divisor_leq(N, batch_block)
    else:
        Nb = 1
        if tp >= P128:
            # Whole pixel axis fits in one tile (small U-Net level): batch
            # images per step so each step still streams ~2 MiB.
            target_stream = 2 << 20
            nb_need = -(-target_stream // max(1, P128 * stream_px))
            nb_fit = max(1, avail // max(1, P128 * vmem_px))
            Nb = _largest_divisor_leq(N, min(N, nb_need, nb_fit))

    # Keep at least 2 grid steps so both v7x TensorCores get work.
    if (N // Nb) * pl.cdiv(P, tp) < 2:
        if N >= 2:
            Nb = _largest_divisor_leq(N, max(1, N // 2))
        elif P128 >= 256:
            tp = max(128, (P128 // 2) // 128 * 128)

    grid = (N // Nb, pl.cdiv(P, tp))
    need = weight_bytes + Nb * tp * vmem_px + margin
    vmem_limit = int(min(capacity, max(budget, need)))

    tile_spec = lambda c: pl.BlockSpec((Nb, c, tp), lambda n, i: (n, 0, i))
    full_spec = lambda s: pl.BlockSpec(s, lambda n, i: (0, 0))

    out3 = pl.pallas_call(
        _attention_kernel,
        out_shape=jax.ShapeDtypeStruct((N, Fl, P), out_dtype),
        grid_spec=pltpu.PrefetchScalarGridSpec(
            num_scalar_prefetch=0,
            grid=grid,
            in_specs=[
                tile_spec(Fg),                 # g tile      (Nb, Fg, tp)
                tile_spec(Fl),                 # x tile      (Nb, Fl, tp)
                full_spec((F_int, Fg)),        # Wg^T        (streaming dtype)
                full_spec((F_int, Fl)),        # Wx^T        (streaming dtype)
                full_spec((F_int, 1)),         # bg + bx     (f32)
                full_spec((1, F_int)),         # Wpsi^T      (f32)
                full_spec((1, 1)),             # bpsi        (f32)
            ],
            out_specs=tile_spec(Fl),
        ),
        compiler_params=pltpu.CompilerParams(
            dimension_semantics=("parallel", "parallel"),
            vmem_limit_bytes=vmem_limit),
    )(g3, x3, wgT, wxT, bsum, wpsiT, bpsi)

    return out3.reshape(N, Fl, H, W)


# ----------------------------- reference ----------------------------------- #

def _reference(g, x, params, *, eps=1e-5):
    """Pure-JAX reference with identical (eval-mode) semantics."""
    N, Fg, H, W = g.shape
    Fl = x.shape[1]
    g2 = jnp.transpose(g, (0, 2, 3, 1)).reshape(-1, Fg).astype(jnp.float32)
    x2 = jnp.transpose(x, (0, 2, 3, 1)).reshape(-1, Fl).astype(jnp.float32)
    wg, bg = _fold_bn(params["wg"], params["bg"], *params["bn_g"], eps=eps)
    wx, bx = _fold_bn(params["wx"], params["bx"], *params["bn_x"], eps=eps)
    wpsi, bpsi = _fold_bn(params["wpsi"], params["bpsi"], *params["bn_psi"],
                          eps=eps)
    a = jnp.maximum((g2 @ wg + bg) + (x2 @ wx + bx), 0.0)
    psi = jax.nn.sigmoid(a @ wpsi + bpsi)
    out2 = x2 * psi
    return jnp.transpose(out2.reshape(N, H, W, Fl), (0, 3, 1, 2))


def make_params(key, F_g, F_l, F_int):
    ks = jax.random.split(key, 6)
    f32 = jnp.float32
    # Conv weights stored as (Cin, Cout) == PyTorch (Cout, Cin, 1, 1) transposed.
    return {
        "wg": 0.1 * jax.random.normal(ks[0], (F_g, F_int), f32),
        "bg": 0.05 * jax.random.normal(ks[1], (F_int,), f32),
        "wx": 0.1 * jax.random.normal(ks[2], (F_l, F_int), f32),
        "bx": 0.05 * jax.random.normal(ks[3], (F_int,), f32),
        "wpsi": 0.1 * jax.random.normal(ks[4], (F_int, 1), f32),
        "bpsi": 0.05 * jax.random.normal(ks[5], (1,), f32),
        # BatchNorm (gamma, beta, running_mean, running_var), eval mode.
        "bn_g": (jnp.ones((F_int,), f32) * 1.1,
                 jnp.zeros((F_int,), f32) + 0.01,
                 jnp.zeros((F_int,), f32) + 0.02,
                 jnp.ones((F_int,), f32) * 0.9),
        "bn_x": (jnp.ones((F_int,), f32) * 0.95,
                 jnp.zeros((F_int,), f32) - 0.01,
                 jnp.zeros((F_int,), f32) - 0.02,
                 jnp.ones((F_int,), f32) * 1.05),
        "bn_psi": (jnp.ones((1,), f32) * 1.2,
                   jnp.zeros((1,), f32) + 0.03,
                   jnp.zeros((1,), f32) + 0.01,
                   jnp.ones((1,), f32) * 0.8),
    }


if __name__ == "__main__":
    key = jax.random.PRNGKey(0)
    k_g, k_x, k_p, k_g2, k_x2 = jax.random.split(key, 5)

    # Small shapes consistent with the module's forward.
    N, F_g, F_l, F_int, H, W = 2, 4, 4, 8, 16, 16
    g = jax.random.normal(k_g, (N, F_g, H, W), jnp.float32)
    x = jax.random.normal(k_x, (N, F_l, H, W), jnp.float32)
    params = make_params(k_p, F_g, F_l, F_int)
    ref = _reference(g, x, params)

    # 1) f32, auto (VMEM-derived) tiling: tight match vs eval-mode semantics.
    out = jax.block_until_ready(attention_block(g, x, params))
    assert out.shape == (N, F_l, H, W)
    assert jnp.allclose(out, ref, atol=1e-5, rtol=1e-5), "f32 auto-tile mismatch"

    # 2) Forced multi-tile pixel grid (exercises the lane-tiled path).
    out_t = jax.block_until_ready(attention_block(g, x, params, tile_pixels=128))
    assert jnp.allclose(out_t, ref, atol=1e-5, rtol=1e-5), "multi-tile mismatch"

    # 3) Several small images per block (Nb > 1 path for small U-Net levels).
    N2 = 4
    g2 = jax.random.normal(k_g2, (N2, F_g, H, W), jnp.float32)
    x2 = jax.random.normal(k_x2, (N2, F_l, H, W), jnp.float32)
    ref2 = _reference(g2, x2, params)
    out2 = jax.block_until_ready(attention_block(g2, x2, params))
    assert out2.shape == (N2, F_l, H, W)
    assert jnp.allclose(out2, ref2, atol=1e-5, rtol=1e-5), "batched-block mismatch"

    # 4) bf16 streaming: inputs already bf16 in HBM (no wrapper cast), f32
    #    accumulation in-kernel, bf16 output; loose tolerance vs f32 reference.
    out_bf16 = jax.block_until_ready(
        attention_block(g.astype(jnp.bfloat16), x.astype(jnp.bfloat16), params))
    assert out_bf16.dtype == jnp.bfloat16
    assert jnp.allclose(out_bf16.astype(jnp.float32), ref,
                        atol=5e-2, rtol=5e-2), "bf16 mismatch vs reference"

    print("KERNEL_OK")
</pallas_src>

<mosaic_0001>
module attributes {stable_mosaic.version = 11 : i64} {
  func.func @_attention_kernel(%arg0: i32, %arg1: i32, %arg2: memref<1x4x256xf32, #tpu.memory_space<vmem>>, %arg3: memref<1x4x256xf32, #tpu.memory_space<vmem>>, %arg4: memref<8x4xf32, #tpu.memory_space<vmem>>, %arg5: memref<8x4xf32, #tpu.memory_space<vmem>>, %arg6: memref<8x1xf32, #tpu.memory_space<vmem>>, %arg7: memref<1x8xf32, #tpu.memory_space<vmem>>, %arg8: memref<1x1xf32, #tpu.memory_space<vmem>>, %arg9: memref<1x4x256xf32, #tpu.memory_space<vmem>>) attributes {dimension_semantics = [#tpu.dimension_semantics<parallel>, #tpu.dimension_semantics<parallel>], iteration_bounds = array<i64: 2, 1>, scalar_prefetch = 0 : i64, scratch_operands = 0 : i64, tpu.core_type = #tpu.core_type<tc>, window_params = [{transform_indices = @transform_0, window_bounds = array<i64: 1, 4, 256>}, {transform_indices = @transform_1, window_bounds = array<i64: 1, 4, 256>}, {pipeline_mode = #tpu.pipeline_mode<synchronous>, transform_indices = @transform_2, window_bounds = array<i64: 8, 4>}, {pipeline_mode = #tpu.pipeline_mode<synchronous>, transform_indices = @transform_3, window_bounds = array<i64: 8, 4>}, {pipeline_mode = #tpu.pipeline_mode<synchronous>, transform_indices = @transform_4, window_bounds = array<i64: 8, 1>}, {pipeline_mode = #tpu.pipeline_mode<synchronous>, transform_indices = @transform_5, window_bounds = array<i64: 1, 8>}, {pipeline_mode = #tpu.pipeline_mode<synchronous>, transform_indices = @transform_6, window_bounds = array<i64: 1, 1>}, {transform_indices = @transform_7, window_bounds = array<i64: 1, 4, 256>}]} {
    %c0 = arith.constant 0 : index
    %c0_0 = arith.constant 0 : index
    %0 = vector.load %arg4[%c0, %c0_0] : memref<8x4xf32, #tpu.memory_space<vmem>>, vector<8x4xf32>
    %c0_1 = arith.constant 0 : index
    %c0_2 = arith.constant 0 : index
    %1 = vector.load %arg5[%c0_1, %c0_2] : memref<8x4xf32, #tpu.memory_space<vmem>>, vector<8x4xf32>
    %c0_3 = arith.constant 0 : index
    %c0_4 = arith.constant 0 : index
    %2 = vector.load %arg6[%c0_3, %c0_4] : memref<8x1xf32, #tpu.memory_space<vmem>>, vector<8x1xf32>
    %c0_5 = arith.constant 0 : index
    %c0_6 = arith.constant 0 : index
    %3 = vector.load %arg7[%c0_5, %c0_6] : memref<1x8xf32, #tpu.memory_space<vmem>>, vector<1x8xf32>
    %c0_7 = arith.constant 0 : index
    %c0_8 = arith.constant 0 : index
    %4 = vector.load %arg8[%c0_7, %c0_8] : memref<1x1xf32, #tpu.memory_space<vmem>>, vector<1x1xf32>
    %c0_9 = arith.constant 0 : index
    %c0_10 = arith.constant 0 : index
    %c0_11 = arith.constant 0 : index
    %5 = vector.load %arg2[%c0_9, %c0_10, %c0_11] : memref<1x4x256xf32, #tpu.memory_space<vmem>>, vector<1x4x256xf32>
    %6 = vector.shape_cast %5 : vector<1x4x256xf32> to vector<4x256xf32>
    %c0_12 = arith.constant 0 : index
    %c0_13 = arith.constant 0 : index
    %c0_14 = arith.constant 0 : index
    %7 = vector.load %arg3[%c0_12, %c0_13, %c0_14] : memref<1x4x256xf32, #tpu.memory_space<vmem>>, vector<1x4x256xf32>
    %8 = vector.shape_cast %7 : vector<1x4x256xf32> to vector<4x256xf32>
    %cst = arith.constant dense<0.000000e+00> : vector<8x256xf32>
    %9 = tpu.matmul %0, %6, %cst {dimension_numbers = #tpu.dot_dimension_numbers<[1], [0], [0], [1], [0, 0, 1, 1], [], []>} : vector<8x4xf32>, vector<4x256xf32>, vector<8x256xf32> -> vector<8x256xf32>
    %cst_15 = arith.constant dense<0.000000e+00> : vector<8x256xf32>
    %10 = tpu.matmul %1, %8, %cst_15 {dimension_numbers = #tpu.dot_dimension_numbers<[1], [0], [0], [1], [0, 0, 1, 1], [], []>} : vector<8x4xf32>, vector<4x256xf32>, vector<8x256xf32> -> vector<8x256xf32>
    %11 = arith.addf %9, %10 : vector<8x256xf32>
    %12 = vector.broadcast %2 : vector<8x1xf32> to vector<8x256xf32>
    %13 = arith.addf %11, %12 : vector<8x256xf32>
    %cst_16 = arith.constant 0.000000e+00 : f32
    %14 = vector.broadcast %cst_16 : f32 to vector<8x256xf32>
    %15 = arith.maximumf %13, %14 : vector<8x256xf32>
    %cst_17 = arith.constant dense<0.000000e+00> : vector<1x256xf32>
    %16 = tpu.matmul %3, %15, %cst_17 {dimension_numbers = #tpu.dot_dimension_numbers<[1], [0], [0], [1], [0, 0, 1, 1], [], []>} : vector<1x8xf32>, vector<8x256xf32>, vector<1x256xf32> -> vector<1x256xf32>
    %17 = vector.broadcast %4 : vector<1x1xf32> to vector<1x256xf32>
    %18 = arith.addf %16, %17 : vector<1x256xf32>
    %19 = arith.negf %18 : vector<1x256xf32>
    %20 = math.exp %19 : vector<1x256xf32>
    %cst_18 = arith.constant 1.000000e+00 : f32
    %21 = vector.broadcast %cst_18 : f32 to vector<1x256xf32>
    %22 = arith.addf %21, %20 : vector<1x256xf32>
    %23 = arith.divf %21, %22 : vector<1x256xf32>
    %24 = vector.broadcast %23 : vector<1x256xf32> to vector<4x256xf32>
    %25 = arith.mulf %8, %24 : vector<4x256xf32>
    %c0_19 = arith.constant 0 : index
    %c0_20 = arith.constant 0 : index
    %c0_21 = arith.constant 0 : index
    %26 = vector.load %arg9[%c0_19, %c0_20, %c0_21] : memref<1x4x256xf32, #tpu.memory_space<vmem>>, vector<1x4x256xf32>
    %27 = vector.shape_cast %26 : vector<1x4x256xf32> to vector<4x256xf32>
    %28 = vector.shape_cast %25 : vector<4x256xf32> to vector<1x4x256xf32>
    tpu.vector_store %arg9[%c0_19, %c0_20, %c0_21], %28 {strides = array<i32>} : memref<1x4x256xf32, #tpu.memory_space<vmem>>, vector<1x4x256xf32>,
    return
  }
  func.func @transform_0(%arg0: i32, %arg1: i32) -> (i32, i32, i32) {
    %c0_i32 = arith.constant 0 : i32
    %c0_i32_0 = arith.constant 0 : i32
    return %arg0, %c0_i32, %arg1 : i32, i32, i32
  }
  func.func @transform_1(%arg0: i32, %arg1: i32) -> (i32, i32, i32) {
    %c0_i32 = arith.constant 0 : i32
    %c0_i32_0 = arith.constant 0 : i32
    return %arg0, %c0_i32, %arg1 : i32, i32, i32
  }
  func.func @transform_2(%arg0: i32, %arg1: i32) -> (i32, i32) {
    %c0_i32 = arith.constant 0 : i32
    %c0_i32_0 = arith.constant 0 : i32
    %c0_i32_1 = arith.constant 0 : i32
    return %c0_i32, %c0_i32_0 : i32, i32
  }
  func.func @transform_3(%arg0: i32, %arg1: i32) -> (i32, i32) {
    %c0_i32 = arith.constant 0 : i32
    %c0_i32_0 = arith.constant 0 : i32
    %c0_i32_1 = arith.constant 0 : i32
    return %c0_i32, %c0_i32_0 : i32, i32
  }
  func.func @transform_4(%arg0: i32, %arg1: i32) -> (i32, i32) {
    %c0_i32 = arith.constant 0 : i32
    %c0_i32_0 = arith.constant 0 : i32
    %c0_i32_1 = arith.constant 0 : i32
    return %c0_i32, %c0_i32_0 : i32, i32
  }
  func.func @transform_5(%arg0: i32, %arg1: i32) -> (i32, i32) {
    %c0_i32 = arith.constant 0 : i32
    %c0_i32_0 = arith.constant 0 : i32
    %c0_i32_1 = arith.constant 0 : i32
    return %c0_i32, %c0_i32_0 : i32, i32
  }
  func.func @transform_6(%arg0: i32, %arg1: i32) -> (i32, i32) {
    %c0_i32 = arith.constant 0 : i32
    %c0_i32_0 = arith.constant 0 : i32
    %c0_i32_1 = arith.constant 0 : i32
    return %c0_i32, %c0_i32_0 : i32, i32
  }
  func.func @transform_7(%arg0: i32, %arg1: i32) -> (i32, i32, i32) {
    %c0_i32 = arith.constant 0 : i32
    %c0_i32_0 = arith.constant 0 : i32
    return %arg0, %c0_i32, %arg1 : i32, i32, i32
  }
}

</mosaic_0001>

<bundles_post_ra>
// kernel: tpu_custom_call.1
= control target key start
LH: loop header
LB: loop body
LE: loop exit
PB: predicated region body
PF: predicated region fallthrough
CT: control target
= control target key end

     0   :  { %s1095_s0 = inlined_call_operand.vmem [shape: f32[2,4,256], index: 0, kind: input, shape index: {}]   ;;  %s1096_s1 = inlined_call_operand.vmem [shape: f32[2,4,256], index: 1, kind: input, shape index: {}]   ;;  %s1097_s2 = inlined_call_operand.vmem [shape: f32[8,4], index: 2, kind: input, shape index: {}]   ;;  %s1098_s3 = inlined_call_operand.vmem [shape: f32[8,4], index: 3, kind: input, shape index: {}]   ;;  %s1099_s4 = inlined_call_operand.vmem [shape: f32[8,1], index: 4, kind: input, shape index: {}]   ;;  %s1100_s5 = inlined_call_operand.vmem [shape: f32[1,8], index: 5, kind: input, shape index: {}]   ;;  %s1101_s6 = inlined_call_operand.<no memory space> [shape: f32[1,1], index: 6, kind: input, shape index: {}]   ;;  %s1102_s7 = inlined_call_operand.hbm [shape: f32[2,4,256], index: 7, kind: output, shape index: {}]  }
   0x1   :  { %v12_v0 = vstv %s1101_s6 }
   0x2   :  { %13 = vst [vmem:[#allocation2] sm:$0x1] %v12_v0 }
   0x3   :  { %14 = vsyncpa [#allocation4], 0 }
   0x4   :  { %16 = vsyncpa [#allocation4 + $0x1], 0  ;;  %s968_s26 = smov 0   ;;  %s970_s27 = smov 0  }
   0x5   :  { %s972_s28 = smov 0   ;;  %s974_s29 = smov 0  }
   0x6   :  { %s976_s30 = smov 0   ;;  %s978_s8 = smov 0  }
   0x7 LB: > { %s745_s6 = sadd.s32 4294967295, %s920_s8   ;;  %s746_s9 = sadd.s32 4294967294, %s920_s8   ;;  %s920_s8 = sphi %s978_s8, %s22_s8   ;;  %s916_s30 = sphi %s976_s30, %s1109_s30   ;;  %s912_s29 = sphi %s974_s29, %s1108_s29   ;;  %s908_s28 = sphi %s972_s28, %s1107_s28   ;;  %s904_s27 = sphi %s970_s27, %s1106_s27   ;;  %s900_s26 = sphi %s968_s26, %s1105_s26  }
   0x8   : > { %s34_s10 = sadd.s32 1, %s916_s30  ;;  %s204_s11 = sadd.s32 1, %s908_s28 }
   0x9   : > { %p36_p0 = scmp.ge.s32.totalorder %s34_s10, 2  ;;  %p214_p1 = scmp.ne.s32.totalorder %s908_s28, %s904_s27 }
   0xa   : > { %p215_p2 = scmp.eq.s32.totalorder %s745_s6, 1  ;;  %p220_p3 = scmp.ne.s32.totalorder %s904_s27, %s900_s26 }
   0xb   : > { %s1111_s10 = smov (%p36_p0, %s34_s10), 0  ;;  %p221_p5 = scmp.eq.s32.totalorder %s746_s9, 1 }
   0xc   : > { %p1008_p4 = por %p215_p2, %p214_p1  ;;  %s199_s13 = ssub.s32 %s916_s30, %s1111_s10 }
   0xd   : > { %p749_p6 = scmp.ge.s32.totalorder %s920_s8, 1  ;;  %p202_p7 = scmp.eq.s32.totalorder %s199_s13, 0 }
   0xe   : > { %p1015_p8 = por %p221_p5, %p220_p3  ;;  %p280_p9 = scmp.lt.s32.totalorder %s920_s8, 3 }
   0xf   : > { %s1021_s15 = scalar_select %p202_p7, %s908_s28, %s204_s11  }
  0x10   : > { %p281_p10 = pnand %p749_p6, %p280_p9 }
  0x11   : > { %p326_p11 = scmp.lt.s32.totalorder (!%p281_p10), %s912_s29, 1  ;;  %v922_v1 = vmov (!%p281_p10), 0.0   ;;  %v348_v2 = vld [vmem:[%s1099_s4] sm:$0xff] (!%p281_p10)  ;;  %v923_v3 = vmov (!%p281_p10), 0   ;;  %vm359_vm0 = vcmask (!%p281_p10), 1043456   ;;  %vm355_vm1 = vcmask (!%p281_p10), 31744  }
  0x12   : > { %284 = sbr.rel (%p281_p10) target bundleno = 523 (0x20b), region = 48  ;;  %428 = vmatprep.mubr.f32.mxu0 (!%p281_p10), %v922_v1  ;;  %601 = vmatprep.mubr.f32.mxu1 (!%p281_p10), %v922_v1  ;;  %v350_v4 = vld [vmem:[#allocation2] sm:$0x1] (!%p281_p10)  ;;  %vm533_vm2 = vcmask (!%p281_p10), 64512   ;;  %v529_v19 = vlaneseq (!%p281_p10)  ;;  %s771_s20 = sshll.u32 (!%p281_p10), %s912_s29, 7 }
  0x13   : > { %831 = vset.pattern.permute.xlu0 (!%p281_p10), %v923_v3  ;;  %v347_v9 = vld [vmem:[%s1098_s3] sm:$0xff] (!%p281_p10) }
  0x14   : > { %517 = vperm.xlu0 (!%p281_p10), %831, %v348_v2   ;;  %v346_v10 = vld [vmem:[%s1097_s2] sm:$0xff] (!%p281_p10)  ;;  %v530_v20 = vshrl.u32 (!%p281_p10), %v529_v19, 7 }
  0x15   : > { %v349_v18 = vld [vmem:[%s1100_s5] sm:$0x1] (!%p281_p10) }
  0x16   : > { %v531_v21 = vsub.s32 (!%p281_p10), 0, %v530_v20 }
  0x18   : > { %526 = vperm.xlu0 (!%p281_p10), %831, %v350_v4  }
  0x19   : > { %s327_s18 = scalar_select %p326_p11, %s912_s29, 1 }
  0x1a   : > { %s924_s29 = smov [#allocation3]  }
  0x1b   : > { %s769_s19 = sshll.u32 %s327_s18, 3  ;;  %s322_s18 = sand.u32 1, %s904_s27  }
  0x1c   : > { %s333_s22 = scalar_lea.vmem %s1095_s0, %s769_s19  ;;  %s343_s25 = scalar_lea.vmem %s1096_s1, %s769_s19 }
  0x1d   : > { %v351_v5 = vld [vmem:[%s333_s22] sm:$0xff]  ;;  %s750_s19 = sshll.u32 %s322_s18, 3  ;;  %s635_s6 = scalar_lea.sflag [#allocation4], %s322_s18 }
  0x1e   : > { %v352_v6 = vld [vmem:[%s343_s25] sm:$0xff]  ;;  %v436_v8 = vcombine.high %v351_v5, %v351_v5  ;;  %s324_s21 = scalar_lea.vmem [#allocation3], %s750_s19  ;;  %s1048_s25 = scalar_lea.hbm %s1102_s7, %s771_s20 }
  0x1f   : > { %v354_v7 = vcombine.high %v352_v6, %v352_v6  ;;  %s651_s22 = sshll.u32 %s324_s21, 4  ;;  %s846_s11 = sshll.u32 %s924_s29, 4  ;;  %s1050_s22 = int_to_ptr.vmem [resolvable:$true] %s651_s22  ;;  %s847_s11 = int_to_ptr.vmem [resolvable:$false] %s846_s11 }
  0x20   : > { %s842_s9 = scalar_lea.vmem %s1050_s22, 128  ;;  %s848_s13 = scalar_lea.vmem %s847_s11, 256 }
  0x21   : > { %755 = vmatprep.subr.msk.mxu0 %vm359_vm0, %v354_v7  ;;  %p843_p12 = scmp.ne.s32.totalorder %s1050_s22, %s842_s9  ;;  %p849_p1 = scmp.lt.s32.totalorder %s1050_s22, %s847_s11 }
  0x22   : > { %756 = vmatpush1.msk.msra.mxu0 %vm359_vm0, %v352_v6  ;;  %p850_p2 = scmp.lt.s32.totalorder %s848_s13, %s842_s9 }
  0x23   : > { %757 = vmatmul.mubr.msk.f32.vlgmr.msra.gmra.mrb[0].mxu0 %vm355_vm1, %v347_v9  ;;  %758 = vmatprep.subr.msk.mxu0 %vm359_vm0, %v436_v8  ;;  %p844_p13 = pnand %p843_p12, %p1008_p4 }
  0x24   : > { %759 = vmatpush1.msk.msra.mxu0 %vm359_vm0, %v351_v5  ;;  %508 = vmatprep.mubr.f32.mxu0 %v922_v1  ;;  %p851_p3 = por %p850_p2, %p849_p1 }
  0x25   : > { %p845_p0 = pneg %p844_p13 }
  0x27   : > { %p852_p5 = pnand %p851_p3, %p845_p0 }
  0x2b   : > { %760 = vmatmul.mubr.msk.f32.vlgmr.msra.gmra.mrb[0].mxu0 %vm355_vm1, %v346_v10 }
  0x93   : > { %v518_v11 = vpop.permute.xlu0 %517 }
  0x97   : > { %v527_v22 = vpop.permute.xlu0 %526 }
  0x98   : > { %v532_v23 = vrot.slane %v527_v22, %v531_v21 }
  0xfe   : > { %v510_v12 = vpop.f32.mrb[0].mxu0 }
  0xff   : > { %v520_v13 = vadd.f32 %v518_v11, %v510_v12  ;;  %v512_v14 = vpop.f32.mrb[1].mxu0 }
 0x100   : > { %v521_v15 = vadd.f32 %v518_v11, %v512_v14 }
 0x101   : > { %v522_v17 = vmax.f32 %v520_v13, 0.0 }
 0x102   : > { %v523_v16 = vmax.f32 %v521_v15, 0.0 }
 0x104   : > { %537 = vmatprep.subr.mxu1 %v523_v16 }
 0x105   : > { %538 = vmatpush1.msra.mxu1 %v522_v17 }
 0x106   : > { %761 = vmatmul.mubr.msk.f32.vlgmr.msra.gmra.mrb[0].mxu1 %vm533_vm2, %v349_v18 }
 0x1d9   : > { %v603_v24 = vpop.f32.mrb[0].mxu1 }
 0x1da   : > { %v604_v25 = vadd.f32 %v603_v24, %v532_v23  ;;  %v605_v26 = vpop.f32.mrb[1].mxu1 }
 0x1db   : > { %v606_v27 = vadd.f32 %v605_v26, %v532_v23 }
 0x1dc   : > { %v762_v28 = vmul.f32 -1.442695, %v604_v25 }
 0x1dd   : > { %v763_v29 = vmul.f32 -1.442695, %v606_v27 }
 0x1de   : > { %834 = vpow2.f32 %v762_v28 }
 0x1df   : > { %836 = vpow2.f32 %v763_v29 }
 0x1e8   : > { %v835_v30 = vpop.eup %834 }
 0x1e9   : > { %v837_v31 = vpop.eup %836  ;;  %v614_v32 = vadd.f32 1.0, %v835_v30 }
 0x1ea   : > { %v615_v33 = vadd.f32 1.0, %v837_v31 }
 0x1eb   : > { %838 = vrcp.f32 %v614_v32 }
 0x1ec   : > { %840 = vrcp.f32 %v615_v33 }
 0x1f5   : > { %v839_v34 = vpop.eup %838 }
 0x1f6   : > { %v841_v35 = vpop.eup %840  ;;  %v623_v36 = vrot.slane %v839_v34, %v531_v21 }
 0x1f7   : > { %v627_v37 = vrot.slane %v841_v35, %v531_v21 }
 0x1f9   : > { %v630_v38 = vcombine.low %v623_v36, %v627_v37 }
 0x1fb   : > { %v632_v39 = vmul.f32 %v630_v38, %v352_v6 }
 0x1fd   : > { %633 = vst [vmem:[%s324_s21] sm:$0xff] %v632_v39 }
 0x1fe   : > { %855 = shalt.err (!%p852_p5)
}
 0x1ff   : > { %s856_s16 = scalar_lea.hbm %s1048_s25, 128  ;;  %s860_s19 = scalar_lea.hbm %s1102_s7, 256 }
 0x200   : > { %p857_p6 = scmp.ne.s32.totalorder %s1048_s25, %s856_s16  ;;  %p861_p10 = scmp.lt.u32.totalorder %s1048_s25, %s1102_s7 }
 0x201   : > { %p862_p11 = scmp.lt.u32.totalorder %s860_s19, %s856_s16  ;;  %p864_p13 = scmp.lt.u32.totalorder %s856_s16, %s1048_s25 }
 0x202   : > { %p858_p7 = pnand %p857_p6, %p1008_p4 }
 0x203   : > { %p863_p12 = por %p862_p11, %p861_p10 }
 0x204   : > { %p859_p9 = pneg %p858_p7 }
 0x205   : > { %p865_p0 = por %p864_p13, %p863_p12 }
 0x207   : > { %p866_p1 = pnand %p865_p0, %p859_p9 }
 0x209   : > { %869 = shalt.err (!%p866_p1)
}
 0x20a   : > { %774 = dma.vmem_to_hbm [thread:$0]  (%p1008_p4), %s1050_s22, 128, %s1048_s25, %s635_s6  }
 0x20b PF: > { %p780_p2 = scmp.ge.s32.totalorder %s920_s8, 2  ;;  %s663_s23 = sand.u32 1, %s900_s26  }
 0x20c   : > { %s664_s24 = scalar_lea.sflag [#allocation4], %s663_s23 }
 0x20d   : > { %p777_p3 = pnand %p780_p2, %p1015_p8 }
 0x20f   : > { %895 = dma.done.wait (!%p777_p3), %s664_s24, 128  }
 0x210   : > { %897 = vsyncadd (!%p777_p3), %s664_s24, 4294967168  ;;  %s22_s8 = sadd.s32 1, %s920_s8   ;;  %s1105_s26 = smov %s904_s27 }
 0x211   : > { %p19_p5 = scmp.ge.s32.totalorder %s22_s8, 4   ;;  %s1106_s27 = smov %s908_s28 }
 0x212   : > { %s1107_s28 = smov %s1021_s15  ;;  %s1108_s29 = smov %s916_s30 }
 0x213   : > { %s1109_s30 = smov %s1111_s10  ;;  %21 = sbr.rel (!%p19_p5) target bundleno = 7 (0x7), region = 86 }
 0x21a   :  { %669 = vsyncpa [#allocation4], 1 }
 0x21b   :  { %671 = vsyncpa [#allocation4 + $0x1], 1 }

</bundles_post_ra>
